<compile_context>
chip_gen: v6e
topology: v6e:2x2x1
jax: 0.10.0
libtpu: 0.0.40
codegen_flags: <defaults>
</compile_context>

<pallas_src>
import functools
import math

import jax
import jax.numpy as jnp
from jax import lax
from jax.experimental import pallas as pl
from jax.experimental.pallas import tpu as pltpu

LANES = 128
ENC_HID = 32                 # MLP_3L(target_dim, 32, 32, enc_dim)
CTRL_HID = 48                # MLP_3L(enc_dim, 48, 48, act_dim)
C0, C1 = 64, 64 + CTRL_HID   # controller "carry" lane window [64, 112)
ONES_LANE = 127              # constant-1 lane carrying all biases


def _round_up(n, m):
    return ((n + m - 1) // m) * m


# --------------------------------------------------------------------------- #
# Host-side (one-time) parameter packing: 5 full (128,128) MXU tiles.
#   lanes 0:32            : encoder hidden
#   lanes td:td+ed        : x_des / state window (only in layer-C columns)
#   lanes 64:112          : controller window (carries -s@v1, then diff@v1+c1)
#   lane 127              : constant 1.0 (biases folded into weight row 127)
# --------------------------------------------------------------------------- #
def pack_params(params):
    w1, b1 = params["w1"], params["b1"]   # (td,32), (1,32)
    w2, b2 = params["w2"], params["b2"]   # (32,32), (1,32)
    w3, b3 = params["w3"], params["b3"]   # (32,ed), (1,ed)
    v1, c1 = params["v1"], params["c1"]   # (ed,48), (1,48)
    v2, c2 = params["v2"], params["c2"]   # (48,48), (1,48)
    v3, c3 = params["v3"], params["c3"]   # (48,ad), (1,ad)

    td, ed, ad = w1.shape[0], w3.shape[1], v3.shape[1]
    assert td + ed <= C0, "layout requires target_dim + encoded_space_dim <= 64"
    assert ad <= LANES, "layout requires action_dim <= 128"

    # Exact algebraic fold: x_des@v1 = h2@(w3@v1) + b3@v1.
    w34 = (w3 @ v1).astype(jnp.float32)            # (32,48)
    c1p = (b3 @ v1 + c1).astype(jnp.float32)       # (1,48)
    eye48 = jnp.eye(CTRL_HID, dtype=jnp.float32)

    def z():
        return jnp.zeros((LANES, LANES), jnp.float32)

    # Layer A: [t | s | 1] -> [t@w1+b1 | -s@v1 | 1]
    wa = z()
    wa = wa.at[0:td, 0:ENC_HID].set(w1.astype(jnp.float32))
    wa = wa.at[td:td + ed, C0:C1].set(-v1.astype(jnp.float32))
    wa = wa.at[ONES_LANE, 0:ENC_HID].set(b1[0].astype(jnp.float32))
    wa = wa.at[ONES_LANE, ONES_LANE].set(1.0)

    # Layer B: encoder layer 2 + identity carry of -s@v1 + ones carry.
    wb = z()
    wb = wb.at[0:ENC_HID, 0:ENC_HID].set(w2.astype(jnp.float32))
    wb = wb.at[C0:C1, C0:C1].set(eye48)
    wb = wb.at[ONES_LANE, 0:ENC_HID].set(b2[0].astype(jnp.float32))
    wb = wb.at[ONES_LANE, ONES_LANE].set(1.0)

    # Layer C: x_des (cols td:td+ed) and diff@v1 + c1 (cols 64:112) in one pass.
    wc = z()
    wc = wc.at[0:ENC_HID, td:td + ed].set(w3.astype(jnp.float32))
    wc = wc.at[0:ENC_HID, C0:C1].set(w34)
    wc = wc.at[C0:C1, C0:C1].set(eye48)          # adds the carried -s@v1
    wc = wc.at[ONES_LANE, td:td + ed].set(b3[0].astype(jnp.float32))
    wc = wc.at[ONES_LANE, C0:C1].set(c1p[0])
    wc = wc.at[ONES_LANE, ONES_LANE].set(1.0)

    # Layer D: controller layer 2.
    wd = z()
    wd = wd.at[C0:C1, C0:C1].set(v2.astype(jnp.float32))
    wd = wd.at[ONES_LANE, C0:C1].set(c2[0].astype(jnp.float32))
    wd = wd.at[ONES_LANE, ONES_LANE].set(1.0)

    # Layer E: controller output (acts at lanes 0:act_dim).
    we = z()
    we = we.at[C0:C1, 0:ad].set(v3.astype(jnp.float32))
    we = we.at[ONES_LANE, 0:ad].set(c3[0].astype(jnp.float32))

    return jnp.stack([wa, wb, wc, wd, we])        # (5, 128, 128)


# --------------------------------------------------------------------------- #
# Kernel: 5 full-width MXU matmuls, mask-protected ReLUs, lane-aligned stores.
# --------------------------------------------------------------------------- #
def _fused_forward_kernel(inp_ref, prm_ref, out_ref):
    x = inp_ref[...]                                        # (TB, 128)

    lane = lax.broadcasted_iota(jnp.int32, (1, LANES), 1)
    enc_mask = lane < ENC_HID   # ReLU encoder lanes only; protect -s@v1 carry

    r1 = jnp.dot(x, prm_ref[0], preferred_element_type=jnp.float32)
    h1 = jnp.where(enc_mask, jnp.maximum(r1, 0.0), r1)
    r2 = jnp.dot(h1, prm_ref[1], preferred_element_type=jnp.float32)
    h2 = jnp.where(enc_mask, jnp.maximum(r2, 0.0), r2)
    # r3: lanes td:td+ed = x_des, lanes 64:112 = diff@v1 + c1, lane 127 = 1
    r3 = jnp.dot(h2, prm_ref[2], preferred_element_type=jnp.float32)
    g1 = jnp.maximum(r3, 0.0)           # plain ReLU is harmless outside window
    r4 = jnp.dot(g1, prm_ref[3], preferred_element_type=jnp.float32)
    g2 = jnp.maximum(r4, 0.0)
    r5 = jnp.dot(g2, prm_ref[4], preferred_element_type=jnp.float32)

    # Three full-width, 128-aligned, unmasked stores into one (TB, 384) slab.
    out_ref[:, 0:LANES] = r5                     # acts_pred at lanes 0:act_dim
    out_ref[:, LANES:2 * LANES] = r3             # x_des at lanes td:td+ed
    out_ref[:, 2 * LANES:3 * LANES] = r3 - x     # diff  at lanes td:td+ed


# --------------------------------------------------------------------------- #
# Jitted wrapper: packs inputs, runs the batch-gridded pallas_call, slices out.
# --------------------------------------------------------------------------- #
@functools.partial(jax.jit, static_argnames=("act_dim",))
def general_model_forward(target_repr, state, prm_slab, act_dim):
    batch, target_dim = target_repr.shape
    enc_dim = state.shape[1]
    assert target_dim + enc_dim <= C0, "target_dim + encoded_space_dim must be <= 64"
    assert act_dim <= LANES
    assert prm_slab.shape == (5, LANES, LANES)

    tb = min(512, _round_up(batch, 8))            # batch tile (multiple of 8)
    padded = _round_up(batch, tb)
    grid = (padded // tb,)

    # One lane-dense (padded_batch, 128) input slab: t | s | ... | 1.0 lane.
    inp = jnp.zeros((padded, LANES), jnp.float32)
    inp = inp.at[:batch, 0:target_dim].set(target_repr.astype(jnp.float32))
    inp = inp.at[:batch, target_dim:target_dim + enc_dim].set(
        state.astype(jnp.float32))
    inp = inp.at[:, ONES_LANE].set(1.0)

    flops = 2 * padded * 5 * LANES * LANES
    bytes_accessed = 4 * (padded * LANES + 5 * LANES * LANES + padded * 3 * LANES)
    cost = pl.CostEstimate(flops=flops, transcendentals=0,
                           bytes_accessed=bytes_accessed)

    out_slab = pl.pallas_call(
        _fused_forward_kernel,
        out_shape=jax.ShapeDtypeStruct((padded, 3 * LANES), jnp.float32),
        grid=grid,
        in_specs=[
            pl.BlockSpec((tb, LANES), lambda i: (i, 0)),        # batch-tiled
            pl.BlockSpec((5, LANES, LANES), lambda i: (0, 0, 0)),  # invariant
        ],
        out_specs=pl.BlockSpec((tb, 3 * LANES), lambda i: (i, 0)),
        compiler_params=pltpu.CompilerParams(
            dimension_semantics=("parallel",)),
        cost_estimate=cost,
    )(inp, prm_slab)

    acts_pred = out_slab[:batch, 0:act_dim]
    x_des = out_slab[:batch, LANES + target_dim:LANES + target_dim + enc_dim]
    diff = out_slab[:batch,
                    2 * LANES + target_dim:2 * LANES + target_dim + enc_dim]
    return acts_pred, x_des, diff


# --------------------------------------------------------------------------- #
# Deterministic parameter init (PyTorch nn.Linear default: U(-k, k),
# k = 1/sqrt(fan_in)); weights stored as (in, out), biases as (1, out).
# --------------------------------------------------------------------------- #
def _linear_init(key, fan_in, fan_out, zero_bias=False):
    kw, kb = jax.random.split(key)
    bound = 1.0 / math.sqrt(fan_in)
    w = jax.random.uniform(kw, (fan_out, fan_in), jnp.float32, -bound, bound)
    if zero_bias:
        b = jnp.zeros((fan_out,), jnp.float32)
    else:
        b = jax.random.uniform(kb, (fan_out,), jnp.float32, -bound, bound)
    return w.T, b.reshape(1, fan_out)


def make_params(key, target_dim, encoded_space_dim, action_dim):
    keys = jax.random.split(key, 6)
    p = {}
    # encoder MLP_3L: target_dim -> 32 -> 32 -> encoded_space_dim
    p["w1"], p["b1"] = _linear_init(keys[0], target_dim, ENC_HID)
    p["w2"], p["b2"] = _linear_init(keys[1], ENC_HID, ENC_HID)
    p["w3"], p["b3"] = _linear_init(keys[2], ENC_HID, encoded_space_dim)
    # controller MLP_3L: encoded_space_dim -> 48 -> 48 -> action_dim
    p["v1"], p["c1"] = _linear_init(keys[3], encoded_space_dim, CTRL_HID)
    p["v2"], p["c2"] = _linear_init(keys[4], CTRL_HID, CTRL_HID)
    # final bias explicitly zeroed in GeneralModel.__init__
    p["v3"], p["c3"] = _linear_init(keys[5], CTRL_HID, action_dim, zero_bias=True)
    return p


# Pure-JAX reference (un-folded, mirrors the PyTorch module) for correctness.
def reference_forward(target_repr, state, p):
    h = jnp.maximum(target_repr @ p["w1"] + p["b1"], 0.0)
    h = jnp.maximum(h @ p["w2"] + p["b2"], 0.0)
    x_des = h @ p["w3"] + p["b3"]
    diff = x_des - state
    g = jnp.maximum(diff @ p["v1"] + p["c1"], 0.0)
    g = jnp.maximum(g @ p["v2"] + p["c2"], 0.0)
    acts = g @ p["v3"] + p["c3"]
    return acts, x_des, diff


if __name__ == "__main__":
    batch = 2
    target_dim = 8
    encoded_space_dim = 4
    action_dim = 4

    key = jax.random.PRNGKey(0)
    k_params, k_target, k_state = jax.random.split(key, 3)

    params = make_params(k_params, target_dim, encoded_space_dim, action_dim)
    target_repr = jax.random.normal(k_target, (batch, target_dim), jnp.float32)
    state = jax.random.normal(k_state, (batch, encoded_space_dim), jnp.float32)

    # One-time packing (hoisted out of the hot path).
    prm_slab = jax.block_until_ready(pack_params(params))

    acts_pred, x_des, diff = general_model_forward(
        target_repr, state, prm_slab, act_dim=action_dim)
    jax.block_until_ready((acts_pred, x_des, diff))

    # Sanity check against pure-JAX reference (w3@v1 fold is exact reassociation).
    ra, rx, rd = reference_forward(target_repr, state, params)
    assert acts_pred.shape == ra.shape and x_des.shape == rx.shape
    assert jnp.allclose(acts_pred, ra, atol=1e-4, rtol=1e-4), "acts_pred mismatch"
    assert jnp.allclose(x_des, rx, atol=1e-5, rtol=1e-5), "x_des mismatch"
    assert jnp.allclose(diff, rd, atol=1e-5, rtol=1e-5), "diff mismatch"

    print("KERNEL_OK")
</pallas_src>

<mosaic_0001>
module attributes {stable_mosaic.version = 11 : i64} {
  func.func @_fused_forward_kernel(%arg0: i32, %arg1: memref<8x128xf32, #tpu.memory_space<vmem>>, %arg2: memref<5x128x128xf32, #tpu.memory_space<vmem>>, %arg3: memref<8x384xf32, #tpu.memory_space<vmem>>) attributes {dimension_semantics = [#tpu.dimension_semantics<parallel>], iteration_bounds = array<i64: 1>, scalar_prefetch = 0 : i64, scratch_operands = 0 : i64, tpu.core_type = #tpu.core_type<tc>, window_params = [{transform_indices = @transform_0, window_bounds = array<i64: 8, 128>}, {pipeline_mode = #tpu.pipeline_mode<synchronous>, transform_indices = @transform_1, window_bounds = array<i64: 5, 128, 128>}, {transform_indices = @transform_2, window_bounds = array<i64: 8, 384>}]} {
    %c0 = arith.constant 0 : index
    %c0_0 = arith.constant 0 : index
    %0 = vector.load %arg1[%c0, %c0_0] : memref<8x128xf32, #tpu.memory_space<vmem>>, vector<8x128xf32>
    %1 = tpu.iota {dimensions = array<i32: 1>} : vector<1x128xi32>
    %c32_i32 = arith.constant 32 : i32
    %2 = vector.broadcast %c32_i32 : i32 to vector<1x128xi32>
    %3 = arith.cmpi slt, %1, %2 : vector<1x128xi32>
    %c0_1 = arith.constant 0 : index
    %c0_2 = arith.constant 0 : index
    %c0_3 = arith.constant 0 : index
    %4 = vector.load %arg2[%c0_1, %c0_2, %c0_3] : memref<5x128x128xf32, #tpu.memory_space<vmem>>, vector<1x128x128xf32>
    %5 = vector.shape_cast %4 : vector<1x128x128xf32> to vector<128x128xf32>
    %cst = arith.constant dense<0.000000e+00> : vector<8x128xf32>
    %6 = tpu.matmul %0, %5, %cst {dimension_numbers = #tpu.dot_dimension_numbers<[1], [0], [0], [1], [0, 0, 1, 1], [], []>} : vector<8x128xf32>, vector<128x128xf32>, vector<8x128xf32> -> vector<8x128xf32>
    %cst_4 = arith.constant 0.000000e+00 : f32
    %7 = vector.broadcast %cst_4 : f32 to vector<8x128xf32>
    %8 = arith.maximumf %6, %7 : vector<8x128xf32>
    %9 = vector.shape_cast %3 : vector<1x128xi1> to vector<1x128xi1>
    %10 = vector.broadcast %9 : vector<1x128xi1> to vector<8x128xi1>
    %11 = arith.select %10, %8, %6 : vector<8x128xi1>, vector<8x128xf32>
    %c1 = arith.constant 1 : index
    %c0_5 = arith.constant 0 : index
    %c0_6 = arith.constant 0 : index
    %12 = vector.load %arg2[%c1, %c0_5, %c0_6] : memref<5x128x128xf32, #tpu.memory_space<vmem>>, vector<1x128x128xf32>
    %13 = vector.shape_cast %12 : vector<1x128x128xf32> to vector<128x128xf32>
    %cst_7 = arith.constant dense<0.000000e+00> : vector<8x128xf32>
    %14 = tpu.matmul %11, %13, %cst_7 {dimension_numbers = #tpu.dot_dimension_numbers<[1], [0], [0], [1], [0, 0, 1, 1], [], []>} : vector<8x128xf32>, vector<128x128xf32>, vector<8x128xf32> -> vector<8x128xf32>
    %cst_8 = arith.constant 0.000000e+00 : f32
    %15 = vector.broadcast %cst_8 : f32 to vector<8x128xf32>
    %16 = arith.maximumf %14, %15 : vector<8x128xf32>
    %17 = vector.shape_cast %3 : vector<1x128xi1> to vector<1x128xi1>
    %18 = vector.broadcast %17 : vector<1x128xi1> to vector<8x128xi1>
    %19 = arith.select %18, %16, %14 : vector<8x128xi1>, vector<8x128xf32>
    %c2 = arith.constant 2 : index
    %c0_9 = arith.constant 0 : index
    %c0_10 = arith.constant 0 : index
    %20 = vector.load %arg2[%c2, %c0_9, %c0_10] : memref<5x128x128xf32, #tpu.memory_space<vmem>>, vector<1x128x128xf32>
    %21 = vector.shape_cast %20 : vector<1x128x128xf32> to vector<128x128xf32>
    %cst_11 = arith.constant dense<0.000000e+00> : vector<8x128xf32>
    %22 = tpu.matmul %19, %21, %cst_11 {dimension_numbers = #tpu.dot_dimension_numbers<[1], [0], [0], [1], [0, 0, 1, 1], [], []>} : vector<8x128xf32>, vector<128x128xf32>, vector<8x128xf32> -> vector<8x128xf32>
    %cst_12 = arith.constant 0.000000e+00 : f32
    %23 = vector.broadcast %cst_12 : f32 to vector<8x128xf32>
    %24 = arith.maximumf %22, %23 : vector<8x128xf32>
    %c3 = arith.constant 3 : index
    %c0_13 = arith.constant 0 : index
    %c0_14 = arith.constant 0 : index
    %25 = vector.load %arg2[%c3, %c0_13, %c0_14] : memref<5x128x128xf32, #tpu.memory_space<vmem>>, vector<1x128x128xf32>
    %26 = vector.shape_cast %25 : vector<1x128x128xf32> to vector<128x128xf32>
    %cst_15 = arith.constant dense<0.000000e+00> : vector<8x128xf32>
    %27 = tpu.matmul %24, %26, %cst_15 {dimension_numbers = #tpu.dot_dimension_numbers<[1], [0], [0], [1], [0, 0, 1, 1], [], []>} : vector<8x128xf32>, vector<128x128xf32>, vector<8x128xf32> -> vector<8x128xf32>
    %cst_16 = arith.constant 0.000000e+00 : f32
    %28 = vector.broadcast %cst_16 : f32 to vector<8x128xf32>
    %29 = arith.maximumf %27, %28 : vector<8x128xf32>
    %c4 = arith.constant 4 : index
    %c0_17 = arith.constant 0 : index
    %c0_18 = arith.constant 0 : index
    %30 = vector.load %arg2[%c4, %c0_17, %c0_18] : memref<5x128x128xf32, #tpu.memory_space<vmem>>, vector<1x128x128xf32>
    %31 = vector.shape_cast %30 : vector<1x128x128xf32> to vector<128x128xf32>
    %cst_19 = arith.constant dense<0.000000e+00> : vector<8x128xf32>
    %32 = tpu.matmul %29, %31, %cst_19 {dimension_numbers = #tpu.dot_dimension_numbers<[1], [0], [0], [1], [0, 0, 1, 1], [], []>} : vector<8x128xf32>, vector<128x128xf32>, vector<8x128xf32> -> vector<8x128xf32>
    %c0_20 = arith.constant 0 : index
    %c0_21 = arith.constant 0 : index
    %33 = vector.load %arg3[%c0_20, %c0_21] : memref<8x384xf32, #tpu.memory_space<vmem>>, vector<8x128xf32>
    tpu.vector_store %arg3[%c0_20, %c0_21], %32 {strides = array<i32>} : memref<8x384xf32, #tpu.memory_space<vmem>>, vector<8x128xf32>,
    %c0_22 = arith.constant 0 : index
    %c128 = arith.constant 128 : index
    %34 = vector.load %arg3[%c0_22, %c128] : memref<8x384xf32, #tpu.memory_space<vmem>>, vector<8x128xf32>
    tpu.vector_store %arg3[%c0_22, %c128], %22 {strides = array<i32>} : memref<8x384xf32, #tpu.memory_space<vmem>>, vector<8x128xf32>,
    %35 = arith.subf %22, %0 : vector<8x128xf32>
    %c0_23 = arith.constant 0 : index
    %c256 = arith.constant 256 : index
    %36 = vector.load %arg3[%c0_23, %c256] : memref<8x384xf32, #tpu.memory_space<vmem>>, vector<8x128xf32>
    tpu.vector_store %arg3[%c0_23, %c256], %35 {strides = array<i32>} : memref<8x384xf32, #tpu.memory_space<vmem>>, vector<8x128xf32>,
    return
  }
  func.func @transform_0(%arg0: i32) -> (i32, i32) {
    %c0_i32 = arith.constant 0 : i32
    %c0_i32_0 = arith.constant 0 : i32
    return %arg0, %c0_i32 : i32, i32
  }
  func.func @transform_1(%arg0: i32) -> (i32, i32, i32) {
    %c0_i32 = arith.constant 0 : i32
    %c0_i32_0 = arith.constant 0 : i32
    %c0_i32_1 = arith.constant 0 : i32
    %c0_i32_2 = arith.constant 0 : i32
    return %c0_i32, %c0_i32_0, %c0_i32_1 : i32, i32, i32
  }
  func.func @transform_2(%arg0: i32) -> (i32, i32) {
    %c0_i32 = arith.constant 0 : i32
    %c0_i32_0 = arith.constant 0 : i32
    return %arg0, %c0_i32 : i32, i32
  }
}

</mosaic_0001>

<bundles_post_ra>
// kernel: general_model_forward.1
= control target key start
LH: loop header
LB: loop body
LE: loop exit
PB: predicated region body
PF: predicated region fallthrough
CT: control target
= control target key end

     0   :  { %7 = vsyncpa [#allocation3], 0  ;;  %s767_s9 = smov [#allocation2]   ;;  %s898_s0 = inlined_call_operand.vmem [shape: f32[8,128], index: 0, kind: input, shape index: {}]   ;;  %s899_s1 = inlined_call_operand.hbm [shape: f32[5,128,128], index: 1, kind: input, shape index: {}]   ;;  %s900_s2 = inlined_call_operand.vmem [shape: f32[8,384], index: 2, kind: output, shape index: {}]  }
   0x1   :  { %s15_s10 = sshll.u32 %s767_s9, 4  ;;  %s16_s10 = int_to_ptr.vmem [resolvable:$true] %s15_s10 }
   0x2   :  { %s753_s11 = scalar_lea.vmem %s16_s10, 10240  ;;  %p758_p1 = scmp.lt.s32.totalorder %s16_s10, %s16_s10 }
   0x3   :  { %p754_p0 = scmp.ne.s32.totalorder %s16_s10, %s753_s11  ;;  %p759_p2 = scmp.lt.s32.totalorder %s753_s11, %s753_s11 }
   0x5   :  { %p760_p3 = por %p759_p2, %p758_p1 }
   0x7   :  { %p761_p4 = pnand %p760_p3, %p754_p0 }
   0x9   :  { %764 = shalt.err (!%p761_p4)
}
   0xa   :  { %s768_s12 = smov 128   ;;  %s769_s13 = smov 8  }
   0xb   :  { %21 = dma.hbm_to_vmem [thread:$0]  %s899_s1, 10240, %s16_s10, [#allocation3], %s768_s12, %s768_s12, %s769_s13  }
   0xc   :  { %765 = dma.done.wait [#allocation3], 10240  }
   0xd   :  { %766 = vsyncadd [#allocation3], 4294957056  ;;  %v770_v0 = vmov 0.0   ;;  %vm771_vm0 = vmmov 0   ;;  %v44_v1 = vld [vmem:[#allocation2 + $0x78] sm:$0xff]  ;;  %v43_v2 = vld [vmem:[#allocation2 + $0x70] sm:$0xff]  ;;  %v26_v48 = vlaneseq }
   0xe   :  { %565 = vmatprep.subr.mxu0 %v770_v0  ;;  %597 = vmatprep.mubr.msk.f32.mxu0 %vm771_vm0, %v770_v0  ;;  %v42_v3 = vld [vmem:[#allocation2 + $0x68] sm:$0xff]  ;;  %v41_v4 = vld [vmem:[#allocation2 + $0x60] sm:$0xff]  ;;  %v135_v5 = vld [vmem:[#allocation2 + $0xf8] sm:$0xff] }
   0xf   :  { %600 = vmatprep.subr.mxu1 %v770_v0  ;;  %632 = vmatprep.mubr.msk.f32.mxu1 %vm771_vm0, %v770_v0  ;;  %v40_v6 = vld [vmem:[#allocation2 + $0x58] sm:$0xff]  ;;  %v134_v7 = vld [vmem:[#allocation2 + $0xf0] sm:$0xff]  ;;  %v133_v8 = vld [vmem:[#allocation2 + $0xe8] sm:$0xff]  ;;  %v27_v49 = vand.u32 127, %v26_v48 }
  0x10   :  { %566 = vmatpush3.msra.mxu0 %v44_v1  ;;  %601 = vmatpush3.msra.mxu1 %v135_v5  ;;  %v39_v9 = vld [vmem:[#allocation2 + $0x50] sm:$0xff]  ;;  %v132_v10 = vld [vmem:[#allocation2 + $0xe0] sm:$0xff]  ;;  %v38_v11 = vld [vmem:[#allocation2 + $0x48] sm:$0xff] }
  0x11   :  { %567 = vmatprep.subr.mxu0 %v770_v0  ;;  %602 = vmatprep.subr.mxu1 %v770_v0  ;;  %v131_v12 = vld [vmem:[#allocation2 + $0xd8] sm:$0xff]  ;;  %v37_v13 = vld [vmem:[#allocation2 + $0x40] sm:$0xff]  ;;  %v130_v14 = vld [vmem:[#allocation2 + $0xd0] sm:$0xff]  ;;  %vm28_vm1 = vcmp.lt.s32.totalorder %v27_v49, 32 }
  0x12   :  { %568 = vmatpush3.msra.mxu0 %v43_v2  ;;  %603 = vmatpush3.msra.mxu1 %v134_v7  ;;  %v36_v15 = vld [vmem:[#allocation2 + $0x38] sm:$0xff]  ;;  %v129_v16 = vld [vmem:[#allocation2 + $0xc8] sm:$0xff]  ;;  %v35_v17 = vld [vmem:[#allocation2 + $0x30] sm:$0xff] }
  0x13   :  { %569 = vmatprep.subr.mxu0 %v770_v0  ;;  %604 = vmatprep.subr.mxu1 %v770_v0  ;;  %v128_v18 = vld [vmem:[#allocation2 + $0xc0] sm:$0xff]  ;;  %v34_v19 = vld [vmem:[#allocation2 + $0x28] sm:$0xff]  ;;  %v127_v20 = vld [vmem:[#allocation2 + $0xb8] sm:$0xff] }
  0x14   :  { %570 = vmatpush3.msra.mxu0 %v42_v3  ;;  %605 = vmatpush3.msra.mxu1 %v133_v8  ;;  %v33_v21 = vld [vmem:[#allocation2 + $0x20] sm:$0xff]  ;;  %v126_v22 = vld [vmem:[#allocation2 + $0xb0] sm:$0xff]  ;;  %v32_v23 = vld [vmem:[#allocation2 + $0x18] sm:$0xff] }
  0x15   :  { %571 = vmatprep.subr.mxu0 %v770_v0  ;;  %606 = vmatprep.subr.mxu1 %v770_v0  ;;  %v125_v24 = vld [vmem:[#allocation2 + $0xa8] sm:$0xff]  ;;  %v31_v25 = vld [vmem:[#allocation2 + $0x10] sm:$0xff]  ;;  %v124_v26 = vld [vmem:[#allocation2 + $0xa0] sm:$0xff] }
  0x16   :  { %572 = vmatpush3.msra.mxu0 %v41_v4  ;;  %607 = vmatpush3.msra.mxu1 %v132_v10  ;;  %v30_v27 = vld [vmem:[#allocation2 + $0x8] sm:$0xff]  ;;  %v123_v28 = vld [vmem:[#allocation2 + $0x98] sm:$0xff]  ;;  %v29_v29 = vld [vmem:[#allocation2] sm:$0xff] }
  0x17   :  { %573 = vmatprep.subr.mxu0 %v770_v0  ;;  %608 = vmatprep.subr.mxu1 %v770_v0  ;;  %v824_v30 = vld [vmem:[%s898_s0] sm:$0xff]  ;;  %v122_v31 = vld [vmem:[#allocation2 + $0x90] sm:$0xff]  ;;  %v121_v32 = vld [vmem:[#allocation2 + $0x88] sm:$0xff] }
  0x18   :  { %574 = vmatpush3.msra.mxu0 %v40_v6  ;;  %609 = vmatpush3.msra.mxu1 %v131_v12  ;;  %v120_v33 = vld [vmem:[#allocation2 + $0x80] sm:$0xff]  ;;  %v224_v34 = vld [vmem:[#allocation2 + $0x178] sm:$0xff]  ;;  %v223_v35 = vld [vmem:[#allocation2 + $0x170] sm:$0xff] }
  0x19   :  { %575 = vmatprep.subr.mxu0 %v770_v0  ;;  %610 = vmatprep.subr.mxu1 %v770_v0  ;;  %v222_v36 = vld [vmem:[#allocation2 + $0x168] sm:$0xff]  ;;  %v221_v37 = vld [vmem:[#allocation2 + $0x160] sm:$0xff]  ;;  %v220_v38 = vld [vmem:[#allocation2 + $0x158] sm:$0xff] }
  0x1a   :  { %576 = vmatpush3.msra.mxu0 %v39_v9  ;;  %611 = vmatpush3.msra.mxu1 %v130_v14  ;;  %v219_v39 = vld [vmem:[#allocation2 + $0x150] sm:$0xff]  ;;  %v218_v40 = vld [vmem:[#allocation2 + $0x148] sm:$0xff]  ;;  %v217_v41 = vld [vmem:[#allocation2 + $0x140] sm:$0xff] }
  0x1b   :  { %577 = vmatprep.subr.mxu0 %v770_v0  ;;  %612 = vmatprep.subr.mxu1 %v770_v0  ;;  %v216_v42 = vld [vmem:[#allocation2 + $0x138] sm:$0xff]  ;;  %v215_v43 = vld [vmem:[#allocation2 + $0x130] sm:$0xff]  ;;  %v214_v44 = vld [vmem:[#allocation2 + $0x128] sm:$0xff] }
  0x1c   :  { %578 = vmatpush3.msra.mxu0 %v38_v11  ;;  %613 = vmatpush3.msra.mxu1 %v129_v16  ;;  %v213_v45 = vld [vmem:[#allocation2 + $0x120] sm:$0xff]  ;;  %v212_v46 = vld [vmem:[#allocation2 + $0x118] sm:$0xff]  ;;  %v211_v47 = vld [vmem:[#allocation2 + $0x110] sm:$0xff] }
  0x1d   :  { %579 = vmatprep.subr.mxu0 %v770_v0  ;;  %614 = vmatprep.subr.mxu1 %v770_v0  ;;  %v210_v54 = vld [vmem:[#allocation2 + $0x108] sm:$0xff]  ;;  %v209_v55 = vld [vmem:[#allocation2 + $0x100] sm:$0xff]  ;;  %v312_v56 = vld [vmem:[#allocation2 + $0x1f8] sm:$0xff] }
  0x1e   :  { %580 = vmatpush3.msra.mxu0 %v37_v13  ;;  %615 = vmatpush3.msra.mxu1 %v128_v18  ;;  %v311_v57 = vld [vmem:[#allocation2 + $0x1f0] sm:$0xff]  ;;  %v310_v58 = vld [vmem:[#allocation2 + $0x1e8] sm:$0xff]  ;;  %v309_v59 = vld [vmem:[#allocation2 + $0x1e0] sm:$0xff] }
  0x1f   :  { %581 = vmatprep.subr.mxu0 %v770_v0  ;;  %616 = vmatprep.subr.mxu1 %v770_v0  ;;  %v308_v60 = vld [vmem:[#allocation2 + $0x1d8] sm:$0xff]  ;;  %v307_v61 = vld [vmem:[#allocation2 + $0x1d0] sm:$0xff]  ;;  %v306_v62 = vld [vmem:[#allocation2 + $0x1c8] sm:$0xff] }
  0x20   :  { %582 = vmatpush3.msra.mxu0 %v36_v15  ;;  %617 = vmatpush3.msra.mxu1 %v127_v20  ;;  %v305_v63 = vld [vmem:[#allocation2 + $0x1c0] sm:$0xff]  ;;  %v304_v1 = vld [vmem:[#allocation2 + $0x1b8] sm:$0xff]  ;;  %v303_v2 = vld [vmem:[#allocation2 + $0x1b0] sm:$0xff] }
  0x21   :  { %583 = vmatprep.subr.mxu0 %v770_v0  ;;  %618 = vmatprep.subr.mxu1 %v770_v0  ;;  %v302_v3 = vld [vmem:[#allocation2 + $0x1a8] sm:$0xff]  ;;  %v301_v4 = vld [vmem:[#allocation2 + $0x1a0] sm:$0xff]  ;;  %v300_v5 = vld [vmem:[#allocation2 + $0x198] sm:$0xff] }
  0x22   :  { %584 = vmatpush3.msra.mxu0 %v35_v17  ;;  %619 = vmatpush3.msra.mxu1 %v126_v22  ;;  %v299_v6 = vld [vmem:[#allocation2 + $0x190] sm:$0xff]  ;;  %v298_v11 = vld [vmem:[#allocation2 + $0x188] sm:$0xff]  ;;  %v297_v12 = vld [vmem:[#allocation2 + $0x180] sm:$0xff] }
  0x23   :  { %585 = vmatprep.subr.mxu0 %v770_v0  ;;  %620 = vmatprep.subr.mxu1 %v770_v0  ;;  %v400_v13 = vld [vmem:[#allocation2 + $0x278] sm:$0xff]  ;;  %v399_v14 = vld [vmem:[#allocation2 + $0x270] sm:$0xff]  ;;  %v398_v15 = vld [vmem:[#allocation2 + $0x268] sm:$0xff] }
  0x24   :  { %586 = vmatpush3.msra.mxu0 %v34_v19  ;;  %621 = vmatpush3.msra.mxu1 %v125_v24  ;;  %v397_v16 = vld [vmem:[#allocation2 + $0x260] sm:$0xff]  ;;  %v396_v17 = vld [vmem:[#allocation2 + $0x258] sm:$0xff]  ;;  %v395_v18 = vld [vmem:[#allocation2 + $0x250] sm:$0xff] }
  0x25   :  { %587 = vmatprep.subr.mxu0 %v770_v0  ;;  %622 = vmatprep.subr.mxu1 %v770_v0  ;;  %v394_v19 = vld [vmem:[#allocation2 + $0x248] sm:$0xff]  ;;  %v393_v20 = vld [vmem:[#allocation2 + $0x240] sm:$0xff]  ;;  %v391_v22 = vld [vmem:[#allocation2 + $0x230] sm:$0xff] }
  0x26   :  { %588 = vmatpush3.msra.mxu0 %v33_v21  ;;  %623 = vmatpush3.msra.mxu1 %v124_v26  ;;  %v392_v21 = vld [vmem:[#allocation2 + $0x238] sm:$0xff]  ;;  %v389_v24 = vld [vmem:[#allocation2 + $0x220] sm:$0xff]  ;;  %v387_v26 = vld [vmem:[#allocation2 + $0x210] sm:$0xff] }
  0x27   :  { %589 = vmatprep.subr.mxu0 %v770_v0  ;;  %624 = vmatprep.subr.mxu1 %v770_v0 }
  0x28   :  { %590 = vmatpush3.msra.mxu0 %v32_v23  ;;  %625 = vmatpush3.msra.mxu1 %v123_v28  ;;  %v390_v23 = vld [vmem:[#allocation2 + $0x228] sm:$0xff] }
  0x29   :  { %591 = vmatprep.subr.mxu0 %v770_v0  ;;  %626 = vmatprep.subr.mxu1 %v770_v0 }
  0x2a   :  { %592 = vmatpush3.msra.mxu0 %v31_v25  ;;  %627 = vmatpush3.msra.mxu1 %v122_v31  ;;  %v388_v25 = vld [vmem:[#allocation2 + $0x218] sm:$0xff] }
  0x2b   :  { %593 = vmatprep.subr.mxu0 %v770_v0  ;;  %628 = vmatprep.subr.mxu1 %v770_v0 }
  0x2c   :  { %594 = vmatpush3.msra.mxu0 %v30_v27  ;;  %629 = vmatpush3.msra.mxu1 %v121_v32  ;;  %v386_v32 = vld [vmem:[#allocation2 + $0x208] sm:$0xff] }
  0x2d   :  { %595 = vmatprep.subr.mxu0 %v770_v0  ;;  %630 = vmatprep.subr.mxu1 %v770_v0 }
  0x2e   :  { %596 = vmatpush3.msra.mxu0 %v29_v29  ;;  %631 = vmatpush3.msra.mxu1 %v120_v33  ;;  %v385_v33 = vld [vmem:[#allocation2 + $0x200] sm:$0xff] }
  0x2f   :  { %598 = vmatmul.mubr.f32.vlgmr.msra.gmra.mxu0 %v824_v30  ;;  %635 = vmatprep.subr.mxu0 %v770_v0 }
  0x30   :  { %667 = vmatprep.mubr.msk.f32.mxu0 %vm771_vm0, %v770_v0  ;;  %670 = vmatprep.subr.mxu1 %v770_v0 }
  0x31   :  { %636 = vmatpush3.msra.mxu0 %v224_v34 }
  0x32   :  { %637 = vmatprep.subr.mxu0 %v770_v0 }
  0x33   :  { %638 = vmatpush3.msra.mxu0 %v223_v35 }
  0x34   :  { %639 = vmatprep.subr.mxu0 %v770_v0 }
  0x35   :  { %640 = vmatpush3.msra.mxu0 %v222_v36 }
  0x36   :  { %641 = vmatprep.subr.mxu0 %v770_v0 }
  0x37   :  { %642 = vmatpush3.msra.mxu0 %v221_v37 }
  0x38   :  { %643 = vmatprep.subr.mxu0 %v770_v0 }
  0x39   :  { %644 = vmatpush3.msra.mxu0 %v220_v38 }
  0x3a   :  { %645 = vmatprep.subr.mxu0 %v770_v0 }
  0x3b   :  { %646 = vmatpush3.msra.mxu0 %v219_v39 }
  0x3c   :  { %647 = vmatprep.subr.mxu0 %v770_v0 }
  0x3d   :  { %648 = vmatpush3.msra.mxu0 %v218_v40 }
  0x3e   :  { %649 = vmatprep.subr.mxu0 %v770_v0 }
  0x3f   :  { %650 = vmatpush3.msra.mxu0 %v217_v41 }
  0x40   :  { %651 = vmatprep.subr.mxu0 %v770_v0 }
  0x41   :  { %652 = vmatpush3.msra.mxu0 %v216_v42 }
  0x42   :  { %653 = vmatprep.subr.mxu0 %v770_v0 }
  0x43   :  { %654 = vmatpush3.msra.mxu0 %v215_v43 }
  0x44   :  { %655 = vmatprep.subr.mxu0 %v770_v0 }
  0x45   :  { %656 = vmatpush3.msra.mxu0 %v214_v44 }
  0x46   :  { %657 = vmatprep.subr.mxu0 %v770_v0 }
  0x47   :  { %658 = vmatpush3.msra.mxu0 %v213_v45 }
  0x48   :  { %659 = vmatprep.subr.mxu0 %v770_v0 }
  0x49   :  { %660 = vmatpush3.msra.mxu0 %v212_v46 }
  0x4a   :  { %661 = vmatprep.subr.mxu0 %v770_v0 }
  0x4b   :  { %662 = vmatpush3.msra.mxu0 %v211_v47 }
  0x4c   :  { %663 = vmatprep.subr.mxu0 %v770_v0 }
  0x4d   :  { %664 = vmatpush3.msra.mxu0 %v210_v54 }
  0x4e   :  { %665 = vmatprep.subr.mxu0 %v770_v0 }
  0x4f   :  { %666 = vmatpush3.msra.mxu0 %v209_v55 }
  0x50   :  { %705 = vmatprep.subr.mxu0 %v770_v0 }
  0xef   :  { %v111_v50 = vpop.f32.mrf.mxu0 }
  0xf0   :  { %v115_v51 = vmax.f32 %v111_v50, 0.0 }
  0xf1   :  { %v599_v52 = vpop.f32.mrf.mxu0 }
  0xf2   :  { %v118_v53 = vsel %vm28_vm1, %v115_v51, %v111_v50 }
  0xf3   :  { %633 = vmatmul.mubr.f32.vlgmr.msra.gmra.mxu1 %v118_v53 }
  0xf4   :  { %702 = vmatprep.mubr.msk.f32.mxu1 %vm771_vm0, %v770_v0  ;;  %671 = vmatpush3.msra.mxu1 %v312_v56 }
  0xf5   :  { %672 = vmatprep.subr.mxu1 %v770_v0 }
  0xf6   :  { %673 = vmatpush3.msra.mxu1 %v311_v57 }
  0xf7   :  { %674 = vmatprep.subr.mxu1 %v770_v0 }
  0xf8   :  { %675 = vmatpush3.msra.mxu1 %v310_v58 }
  0xf9   :  { %676 = vmatprep.subr.mxu1 %v770_v0 }
  0xfa   :  { %677 = vmatpush3.msra.mxu1 %v309_v59 }
  0xfb   :  { %678 = vmatprep.subr.mxu1 %v770_v0 }
  0xfc   :  { %679 = vmatpush3.msra.mxu1 %v308_v60 }
  0xfd   :  { %680 = vmatprep.subr.mxu1 %v770_v0 }
  0xfe   :  { %681 = vmatpush3.msra.mxu1 %v307_v61 }
  0xff   :  { %682 = vmatprep.subr.mxu1 %v770_v0 }
 0x100   :  { %683 = vmatpush3.msra.mxu1 %v306_v62 }
 0x101   :  { %684 = vmatprep.subr.mxu1 %v770_v0 }
 0x102   :  { %685 = vmatpush3.msra.mxu1 %v305_v63 }
 0x103   :  { %686 = vmatprep.subr.mxu1 %v770_v0 }
 0x104   :  { %687 = vmatpush3.msra.mxu1 %v304_v1 }
 0x105   :  { %688 = vmatprep.subr.mxu1 %v770_v0 }
 0x106   :  { %689 = vmatpush3.msra.mxu1 %v303_v2 }
 0x107   :  { %690 = vmatprep.subr.mxu1 %v770_v0 }
 0x108   :  { %691 = vmatpush3.msra.mxu1 %v302_v3 }
 0x109   :  { %692 = vmatprep.subr.mxu1 %v770_v0 }
 0x10a   :  { %693 = vmatpush3.msra.mxu1 %v301_v4 }
 0x10b   :  { %694 = vmatprep.subr.mxu1 %v770_v0 }
 0x10c   :  { %695 = vmatpush3.msra.mxu1 %v300_v5 }
 0x10d   :  { %696 = vmatprep.subr.mxu1 %v770_v0 }
 0x10e   :  { %697 = vmatpush3.msra.mxu1 %v299_v6 }
 0x10f   :  { %698 = vmatprep.subr.mxu1 %v770_v0 }
 0x110   :  { %699 = vmatpush3.msra.mxu1 %v298_v11 }
 0x111   :  { %700 = vmatprep.subr.mxu1 %v770_v0 }
 0x112   :  { %701 = vmatpush3.msra.mxu1 %v297_v12 }
 0x1b3   :  { %v202_v7 = vpop.f32.mrf.mxu1 }
 0x1b4   :  { %v206_v8 = vmax.f32 %v202_v7, 0.0 }
 0x1b5   :  { %v634_v9 = vpop.f32.mrf.mxu1 }
 0x1b6   :  { %v207_v10 = vsel %vm28_vm1, %v206_v8, %v202_v7 }
 0x1b7   :  { %668 = vmatmul.mubr.f32.vlgmr.msra.gmra.mxu0 %v207_v10 }
 0x1b8   :  { %737 = vmatprep.mubr.msk.f32.mxu0 %vm771_vm0, %v770_v0  ;;  %706 = vmatpush3.msra.mxu0 %v400_v13 }
 0x1b9   :  { %707 = vmatprep.subr.mxu0 %v770_v0 }
 0x1ba   :  { %708 = vmatpush3.msra.mxu0 %v399_v14 }
 0x1bb   :  { %709 = vmatprep.subr.mxu0 %v770_v0 }
 0x1bc   :  { %710 = vmatpush3.msra.mxu0 %v398_v15 }
 0x1bd   :  { %711 = vmatprep.subr.mxu0 %v770_v0 }
 0x1be   :  { %712 = vmatpush3.msra.mxu0 %v397_v16 }
 0x1bf   :  { %713 = vmatprep.subr.mxu0 %v770_v0 }
 0x1c0   :  { %714 = vmatpush3.msra.mxu0 %v396_v17 }
 0x1c1   :  { %715 = vmatprep.subr.mxu0 %v770_v0 }
 0x1c2   :  { %716 = vmatpush3.msra.mxu0 %v395_v18 }
 0x1c3   :  { %717 = vmatprep.subr.mxu0 %v770_v0 }
 0x1c4   :  { %718 = vmatpush3.msra.mxu0 %v394_v19 }
 0x1c5   :  { %719 = vmatprep.subr.mxu0 %v770_v0 }
 0x1c6   :  { %720 = vmatpush3.msra.mxu0 %v393_v20 }
 0x1c7   :  { %721 = vmatprep.subr.mxu0 %v770_v0 }
 0x1c8   :  { %722 = vmatpush3.msra.mxu0 %v392_v21 }
 0x1c9   :  { %723 = vmatprep.subr.mxu0 %v770_v0 }
 0x1ca   :  { %724 = vmatpush3.msra.mxu0 %v391_v22 }
 0x1cb   :  { %725 = vmatprep.subr.mxu0 %v770_v0 }
 0x1cc   :  { %726 = vmatpush3.msra.mxu0 %v390_v23 }
 0x1cd   :  { %727 = vmatprep.subr.mxu0 %v770_v0 }
 0x1ce   :  { %728 = vmatpush3.msra.mxu0 %v389_v24 }
 0x1cf   :  { %729 = vmatprep.subr.mxu0 %v770_v0 }
 0x1d0   :  { %730 = vmatpush3.msra.mxu0 %v388_v25 }
 0x1d1   :  { %731 = vmatprep.subr.mxu0 %v770_v0 }
 0x1d2   :  { %732 = vmatpush3.msra.mxu0 %v387_v26 }
 0x1d3   :  { %733 = vmatprep.subr.mxu0 %v770_v0 }
 0x1d4   :  { %734 = vmatpush3.msra.mxu0 %v386_v32 }
 0x1d5   :  { %735 = vmatprep.subr.mxu0 %v770_v0 }
 0x1d6   :  { %736 = vmatpush3.msra.mxu0 %v385_v33 }
 0x277   :  { %v291_v27 = vpop.f32.mrf.mxu0 }
 0x278   :  { %v295_v28 = vmax.f32 %v291_v27, 0.0  ;;  %472 = vst [vmem:[%s900_s2 + $0x8] sm:$0xff] %v291_v27  ;;  %v473_v29 = vsub.f32 %v291_v27, %v824_v30 }
 0x279   :  { %v669_v31 = vpop.f32.mrf.mxu0 }
 0x27a   :  { %474 = vst [vmem:[%s900_s2 + $0x10] sm:$0xff] %v473_v29  ;;  %703 = vmatmul.mubr.f32.vlgmr.msra.gmra.mxu1 %v295_v28 }
 0x33a   :  { %v379_v34 = vpop.f32.mrf.mxu1 }
 0x33b   :  { %v383_v35 = vmax.f32 %v379_v34, 0.0 }
 0x33c   :  { %v704_v36 = vpop.f32.mrf.mxu1 }
 0x33d   :  { %738 = vmatmul.mubr.f32.vlgmr.msra.gmra.mxu0 %v383_v35 }
 0x3fd   :  { %v467_v37 = vpop.f32.mrf.mxu0 }
 0x3fe   :  { %471 = vst [vmem:[%s900_s2] sm:$0xff] %v467_v37 }
 0x3ff   :  { %v739_v30 = vpop.f32.mrf.mxu0 }
 0x400   :  { %479 = vsyncpa [#allocation3], 1 }

</bundles_post_ra>
